<compile_context>
chip_gen: v7x
topology: tpu7x:2x2x1
jax: 0.10.0
libtpu: 0.0.40
codegen_flags: <defaults>
</compile_context>

<pallas_src>
import functools

import jax
import jax.numpy as jnp
from jax import lax
from jax.experimental import pallas as pl
from jax.experimental.pallas import tpu as pltpu

LANES = 128            # vreg lane width
MAX_TILE_ROWS = 1024   # (1024,128) f32 tile = 512 KiB per input per buffer
NUM_CORES = 2          # leading "parallel" axis for v7x megacore; ok on 1-TC chips


def _hinge_sum_kernel(o_ref, t_ref, part_ref, acc_ref, *,
                      n_elems, tile_rows, steps):
    c = pl.program_id(0)          # core / outer split
    i = pl.program_id(1)          # sequential step within this core's slice

    @pl.when(i == 0)
    def _():
        acc_ref[...] = jnp.zeros_like(acc_ref)

    # Global row/lane indices of this tile, for ragged-tail / OOB-block masking.
    blk = c * steps + i
    row = lax.broadcasted_iota(jnp.int32, (tile_rows, LANES), 0) + blk * tile_rows
    lane = lax.broadcasted_iota(jnp.int32, (tile_rows, LANES), 1)
    n_full_rows = n_elems // LANES
    rem = n_elems % LANES
    valid = (row < n_full_rows) | ((row == n_full_rows) & (lane < rem))

    # Hot path: upcast in-register, elementwise hinge, pure VPU accumulate.
    o = o_ref[...].astype(jnp.float32)
    t = t_ref[...].astype(jnp.float32)
    h = jnp.maximum(1.0 - o * t, 0.0)
    acc_ref[...] = acc_ref[...] + jnp.where(valid, h, jnp.float32(0.0))

    # Single reduction at the very end: fold sublanes -> lane-dense (1,128).
    @pl.when(i == steps - 1)
    def _():
        part_ref[...] = jnp.sum(acc_ref[...], axis=0, keepdims=True)


def hinge_loss(output, target):
    assert output.shape == target.shape, (output.shape, target.shape)
    n_elems = output.size

    o = output.reshape(-1)
    t = target.reshape(-1)

    rows = pl.cdiv(n_elems, LANES)
    padded = rows * LANES
    if padded != n_elems:
        # <128 pad elements; masked out in-kernel, so the value is irrelevant.
        o = jnp.pad(o, (0, padded - n_elems))
        t = jnp.pad(t, (0, padded - n_elems))

    o2 = o.reshape(rows, LANES)
    t2 = t.reshape(rows, LANES)

    # Tile choice: whole array if small (single-block grid, exempt from the
    # (8,128) constraint), otherwise large 16-sublane-aligned row tiles.
    if rows <= MAX_TILE_ROWS:
        tile_rows = rows
    else:
        tile_rows = MAX_TILE_ROWS          # multiple of 16 -> ok for bf16 too

    n_blocks = pl.cdiv(rows, tile_rows)
    cores = NUM_CORES if n_blocks >= NUM_CORES else 1
    steps = pl.cdiv(n_blocks, cores)

    kernel = functools.partial(
        _hinge_sum_kernel, n_elems=n_elems, tile_rows=tile_rows, steps=steps)

    in_map = lambda c, i: (c * steps + i, 0)

    itemsize = o2.dtype.itemsize
    cost = pl.CostEstimate(
        flops=3 * n_elems,
        transcendentals=0,
        bytes_accessed=2 * padded * itemsize + cores * LANES * 4,
    )

    partials = pl.pallas_call(
        kernel,
        out_shape=jax.ShapeDtypeStruct((cores, LANES), jnp.float32),
        grid_spec=pltpu.PrefetchScalarGridSpec(
            num_scalar_prefetch=0,
            grid=(cores, steps),
            in_specs=[
                pl.BlockSpec((tile_rows, LANES), in_map),
                pl.BlockSpec((tile_rows, LANES), in_map),
            ],
            out_specs=pl.BlockSpec((1, LANES), lambda c, i: (c, 0)),
            scratch_shapes=[pltpu.VMEM((tile_rows, LANES), jnp.float32)],
        ),
        compiler_params=pltpu.CompilerParams(
            dimension_semantics=("parallel", "arbitrary"),
            # Footprint: 2 inputs x 2 pipeline buffers x <=512 KiB + 512 KiB
            # accumulator (~2.5 MiB f32).  32 MiB is safe on v5e/v6e (128 MiB
            # physical) and v7x (64 MiB physical).
            vmem_limit_bytes=32 * 1024 * 1024,
        ),
        cost_estimate=cost,
    )(o2, t2)

    # Combine per-core / per-lane partials and normalize by the true count.
    return jnp.sum(partials) / jnp.float32(n_elems)


if __name__ == "__main__":
    key = jax.random.PRNGKey(0)
    k1, k2 = jax.random.split(key)
    # shapes consistent with a GAN discriminator output: NCHW [2, 4, 16, 16]
    output = jax.random.normal(k1, (2, 4, 16, 16), dtype=jnp.float32)
    target = jnp.sign(jax.random.normal(k2, (2, 4, 16, 16), dtype=jnp.float32))

    loss = hinge_loss(output, target)
    jax.block_until_ready(loss)

    # reference check in plain JAX
    ref = jnp.mean(jnp.maximum(1.0 - output * target, 0.0))
    assert jnp.allclose(loss, ref, rtol=1e-6, atol=1e-6), (loss, ref)

    print("KERNEL_OK")
</pallas_src>

<mosaic_0001>
module attributes {stable_mosaic.version = 11 : i64} {
  func.func @_hinge_sum_kernel(%arg0: i32, %arg1: i32, %arg2: memref<16x128xf32, #tpu.memory_space<vmem>>, %arg3: memref<16x128xf32, #tpu.memory_space<vmem>>, %arg4: memref<1x128xf32, #tpu.memory_space<vmem>>, %arg5: memref<16x128xf32, #tpu.memory_space<vmem>>) attributes {dimension_semantics = [#tpu.dimension_semantics<parallel>, #tpu.dimension_semantics<arbitrary>], iteration_bounds = array<i64: 1, 1>, scalar_prefetch = 0 : i64, scratch_operands = 1 : i64, tpu.core_type = #tpu.core_type<tc>, window_params = [{transform_indices = @transform_0, window_bounds = array<i64: 16, 128>}, {transform_indices = @transform_1, window_bounds = array<i64: 16, 128>}, {transform_indices = @transform_2, window_bounds = array<i64: 1, 128>}]} {
    %c0_i32 = arith.constant 0 : i32
    %0 = arith.cmpi eq, %arg1, %c0_i32 : i32
    %1 = arith.extui %0 : i1 to i32
    %c0_i32_0 = arith.constant 0 : i32
    %2 = arith.cmpi ne, %1, %c0_i32_0 : i32
    scf.if %2 {
      %cst_15 = arith.constant 0.000000e+00 : f32
      %33 = vector.broadcast %cst_15 : f32 to vector<16x128xf32>
      %c0_16 = arith.constant 0 : index
      %c0_17 = arith.constant 0 : index
      %34 = vector.load %arg5[%c0_16, %c0_17] : memref<16x128xf32, #tpu.memory_space<vmem>>, vector<16x128xf32>
      tpu.vector_store %arg5[%c0_16, %c0_17], %33 {strides = array<i32>} : memref<16x128xf32, #tpu.memory_space<vmem>>, vector<16x128xf32>,
    } else {
    }
    %c1_i32 = arith.constant 1 : i32
    %3 = arith.muli %arg0, %c1_i32 : i32
    %4 = arith.addi %3, %arg1 : i32
    %5 = tpu.iota {dimensions = array<i32: 0>} : vector<16x128xi32>
    %c16_i32 = arith.constant 16 : i32
    %6 = arith.muli %4, %c16_i32 : i32
    %7 = vector.broadcast %6 : i32 to vector<16x128xi32>
    %8 = arith.addi %5, %7 : vector<16x128xi32>
    %9 = tpu.iota {dimensions = array<i32: 1>} : vector<16x128xi32>
    %c16_i32_1 = arith.constant 16 : i32
    %10 = vector.broadcast %c16_i32_1 : i32 to vector<16x128xi32>
    %11 = arith.cmpi slt, %8, %10 : vector<16x128xi32>
    %c16_i32_2 = arith.constant 16 : i32
    %12 = vector.broadcast %c16_i32_2 : i32 to vector<16x128xi32>
    %13 = arith.cmpi eq, %8, %12 : vector<16x128xi32>
    %c0_i32_3 = arith.constant 0 : i32
    %14 = vector.broadcast %c0_i32_3 : i32 to vector<16x128xi32>
    %15 = arith.cmpi slt, %9, %14 : vector<16x128xi32>
    %16 = arith.andi %13, %15 : vector<16x128xi1>
    %17 = arith.ori %11, %16 : vector<16x128xi1>
    %c0 = arith.constant 0 : index
    %c0_4 = arith.constant 0 : index
    %18 = vector.load %arg2[%c0, %c0_4] : memref<16x128xf32, #tpu.memory_space<vmem>>, vector<16x128xf32>
    %c0_5 = arith.constant 0 : index
    %c0_6 = arith.constant 0 : index
    %19 = vector.load %arg3[%c0_5, %c0_6] : memref<16x128xf32, #tpu.memory_space<vmem>>, vector<16x128xf32>
    %20 = arith.mulf %18, %19 : vector<16x128xf32>
    %cst = arith.constant 1.000000e+00 : f32
    %21 = vector.broadcast %cst : f32 to vector<16x128xf32>
    %22 = arith.subf %21, %20 : vector<16x128xf32>
    %cst_7 = arith.constant 0.000000e+00 : f32
    %23 = vector.broadcast %cst_7 : f32 to vector<16x128xf32>
    %24 = arith.maximumf %22, %23 : vector<16x128xf32>
    %c0_8 = arith.constant 0 : index
    %c0_9 = arith.constant 0 : index
    %25 = vector.load %arg5[%c0_8, %c0_9] : memref<16x128xf32, #tpu.memory_space<vmem>>, vector<16x128xf32>
    %cst_10 = arith.constant 0.000000e+00 : f32
    %26 = vector.broadcast %cst_10 : f32 to vector<16x128xf32>
    %27 = arith.select %17, %24, %26 : vector<16x128xi1>, vector<16x128xf32>
    %28 = arith.addf %25, %27 : vector<16x128xf32>
    %c0_11 = arith.constant 0 : index
    %c0_12 = arith.constant 0 : index
    %29 = vector.load %arg5[%c0_11, %c0_12] : memref<16x128xf32, #tpu.memory_space<vmem>>, vector<16x128xf32>
    tpu.vector_store %arg5[%c0_11, %c0_12], %28 {strides = array<i32>} : memref<16x128xf32, #tpu.memory_space<vmem>>, vector<16x128xf32>,
    %c0_i32_13 = arith.constant 0 : i32
    %30 = arith.cmpi eq, %arg1, %c0_i32_13 : i32
    %31 = arith.extui %30 : i1 to i32
    %c0_i32_14 = arith.constant 0 : i32
    %32 = arith.cmpi ne, %31, %c0_i32_14 : i32
    scf.if %32 {
      %c0_15 = arith.constant 0 : index
      %c0_16 = arith.constant 0 : index
      %33 = vector.load %arg5[%c0_15, %c0_16] : memref<16x128xf32, #tpu.memory_space<vmem>>, vector<16x128xf32>
      %cst_17 = arith.constant dense<0.000000e+00> : vector<128xf32>
      %34 = vector.multi_reduction <add>, %33, %cst_17 [0] : vector<16x128xf32> to vector<128xf32>
      %35 = vector.shape_cast %34 : vector<128xf32> to vector<1x128xf32>
      %c0_18 = arith.constant 0 : index
      %c0_19 = arith.constant 0 : index
      %36 = vector.load %arg4[%c0_18, %c0_19] : memref<1x128xf32, #tpu.memory_space<vmem>>, vector<1x128xf32>
      tpu.vector_store %arg4[%c0_18, %c0_19], %35 {strides = array<i32>} : memref<1x128xf32, #tpu.memory_space<vmem>>, vector<1x128xf32>,
    } else {
    }
    return
  }
  func.func @transform_0(%arg0: i32, %arg1: i32) -> (i32, i32) {
    %c1_i32 = arith.constant 1 : i32
    %0 = arith.muli %arg0, %c1_i32 : i32
    %1 = arith.addi %0, %arg1 : i32
    %c0_i32 = arith.constant 0 : i32
    %c0_i32_0 = arith.constant 0 : i32
    return %1, %c0_i32 : i32, i32
  }
  func.func @transform_1(%arg0: i32, %arg1: i32) -> (i32, i32) {
    %c1_i32 = arith.constant 1 : i32
    %0 = arith.muli %arg0, %c1_i32 : i32
    %1 = arith.addi %0, %arg1 : i32
    %c0_i32 = arith.constant 0 : i32
    %c0_i32_0 = arith.constant 0 : i32
    return %1, %c0_i32 : i32, i32
  }
  func.func @transform_2(%arg0: i32, %arg1: i32) -> (i32, i32) {
    %c0_i32 = arith.constant 0 : i32
    %c0_i32_0 = arith.constant 0 : i32
    return %arg0, %c0_i32 : i32, i32
  }
}

</mosaic_0001>

<bundles_post_ra>
// kernel: tpu_custom_call.1
= control target key start
LH: loop header
LB: loop body
LE: loop exit
PB: predicated region body
PF: predicated region fallthrough
CT: control target
= control target key end

     0   :  { %7 = vsyncpa [#allocation4], 0  ;;  %s257_s0 = inlined_call_operand.hbm [shape: f32[16,128], index: 0, kind: input, shape index: {}]   ;;  %s258_s1 = inlined_call_operand.hbm [shape: f32[16,128], index: 1, kind: input, shape index: {}]   ;;  %s259_s2 = inlined_call_operand.hbm [shape: f32[1,128], index: 2, kind: output, shape index: {}]  }
   0x1   :  { %8 = vsyncpa [#allocation7], 0 }
   0x2   :  { %9 = vsyncpa [#allocation5], 0  ;;  %s201_s9 = smov [#allocation3]   ;;  %s129_s13 = scalar_lea.hbm %s257_s0, 256 }
   0x3   :  { %s19_s10 = sshll.u32 %s201_s9, 4  ;;  %p130_p0 = scmp.ne.s32.totalorder %s257_s0, %s129_s13  ;;  %s20_s10 = int_to_ptr.vmem [resolvable:$true] %s19_s10 }
   0x4   :  { %p133_p1 = scmp.lt.u32.totalorder %s129_s13, %s257_s0 }
   0x6   :  { %p135_p2 = pnand %p133_p1, %p130_p0 }
   0x8   :  { %138 = shalt.err (!%p135_p2)
}
   0x9   :  { %s139_s18 = scalar_lea.vmem %s20_s10, 256  ;;  %p144_p4 = scmp.lt.s32.totalorder %s20_s10, %s20_s10 }
   0xa   :  { %p140_p3 = scmp.ne.s32.totalorder %s20_s10, %s139_s18  ;;  %p145_p5 = scmp.lt.s32.totalorder %s139_s18, %s139_s18 }
   0xc   :  { %p146_p6 = por %p145_p5, %p144_p4 }
   0xe   :  { %p147_p7 = pnand %p146_p6, %p140_p3 }
  0x10   :  { %150 = shalt.err (!%p147_p7)
}
  0x11   :  { %s202_s19 = smov 128   ;;  %s203_s20 = smov 8  }
  0x12   :  { %25 = dma.hbm_to_vmem [thread:$0]  %s257_s0, 256, %s20_s10, [#allocation4], %s202_s19, %s202_s19, %s203_s20  }
  0x13   :  { %s204_s23 = smov [#allocation6]   ;;  %s151_s27 = scalar_lea.hbm %s258_s1, 256 }
  0x14   :  { %s35_s24 = sshll.u32 %s204_s23, 4  ;;  %p152_p8 = scmp.ne.s32.totalorder %s258_s1, %s151_s27  ;;  %s36_s24 = int_to_ptr.vmem [resolvable:$true] %s35_s24 }
  0x15   :  { %p155_p9 = scmp.lt.u32.totalorder %s151_s27, %s258_s1 }
  0x17   :  { %p157_p10 = pnand %p155_p9, %p152_p8 }
  0x19   :  { %160 = shalt.err (!%p157_p10)
}
  0x1a   :  { %s161_s4 = scalar_lea.vmem %s36_s24, 256  ;;  %p166_p12 = scmp.lt.s32.totalorder %s36_s24, %s36_s24 }
  0x1b   :  { %p162_p11 = scmp.ne.s32.totalorder %s36_s24, %s161_s4  ;;  %p167_p13 = scmp.lt.s32.totalorder %s161_s4, %s161_s4 }
  0x1d   :  { %p168_p0 = por %p167_p13, %p166_p12 }
  0x1f   :  { %p169_p1 = pnand %p168_p0, %p162_p11 }
  0x21   :  { %172 = shalt.err (!%p169_p1)
}
  0x22   :  { %41 = dma.hbm_to_vmem [thread:$0]  %s258_s1, 256, %s36_s24, [#allocation7], %s202_s19, %s202_s19, %s203_s20  }
  0x23   :  { %195 = dma.done.wait [#allocation4], 256  }
  0x24   :  { %196 = vsyncadd [#allocation4], 4294967040 }
  0x25   :  { %197 = dma.done.wait [#allocation7], 256  }
  0x26   :  { %198 = vsyncadd [#allocation7], 4294967040  ;;  %v77_v0 = vld [vmem:[#allocation3] sm:$0xff]  ;;  %v78_v1 = vld [vmem:[#allocation3 + $0x8] sm:$0xff]  ;;  %s205_s1 = smov [#allocation8]  }
  0x27   :  { %v79_v2 = vld [vmem:[#allocation6] sm:$0xff]  ;;  %v80_v3 = vld [vmem:[#allocation6 + $0x8] sm:$0xff]  ;;  %s114_s6 = sshll.u32 %s205_s1, 4  ;;  %s115_s6 = int_to_ptr.vmem [resolvable:$true] %s114_s6 }
  0x28   :  { %v81_v4 = vmul.f32 %v79_v2, %v77_v0  ;;  %v82_v5 = vmul.f32 %v80_v3, %v78_v1  ;;  %s173_s7 = scalar_lea.vmem %s115_s6, 16  ;;  %s177_s8 = scalar_lea.vmem %s115_s6, 32 }
  0x29   :  { %p174_p2 = scmp.ne.s32.totalorder %s115_s6, %s173_s7  ;;  %p178_p3 = scmp.lt.s32.totalorder %s115_s6, %s115_s6 }
  0x2a   :  { %v83_v6 = vsub.f32 1.0, %v81_v4  ;;  %v84_v7 = vsub.f32 1.0, %v82_v5  ;;  %p179_p4 = scmp.lt.s32.totalorder %s177_s8, %s173_s7 }
  0x2c   :  { %v85_v8 = vmax.f32 %v83_v6, 0.0  ;;  %v86_v9 = vmax.f32 %v84_v7, 0.0  ;;  %p180_p5 = por %p179_p4, %p178_p3 }
  0x2e   :  { %v100_v10 = vadd.f32 %v86_v9, %v85_v8  ;;  %p181_p6 = pnand %p180_p5, %p174_p2 }
  0x30   :  { %v101_v11 = vrot.slane %v100_v10, 4 }
  0x32   :  { %v102_v12 = vadd.f32 %v101_v11, %v100_v10 }
  0x34   :  { %v103_v13 = vrot.slane %v102_v12, 2 }
  0x36   :  { %v104_v14 = vadd.f32 %v103_v13, %v102_v12 }
  0x38   :  { %v105_v15 = vrot.slane %v104_v14, 1 }
  0x3a   :  { %v106_v16 = vadd.f32 %v105_v15, %v104_v14 }
  0x3c   :  { %107 = vst [vmem:[#allocation8] sm:$0x1] %v106_v16 }
  0x3d   :  { %184 = shalt.err (!%p181_p6)
}
  0x3e   :  { %s185_s11 = scalar_lea.hbm %s259_s2, 16 }
  0x3f   :  { %p186_p7 = scmp.ne.s32.totalorder %s259_s2, %s185_s11  ;;  %p189_p8 = scmp.lt.u32.totalorder %s185_s11, %s259_s2 }
  0x41   :  { %p191_p9 = pnand %p189_p8, %p186_p7 }
  0x43   :  { %194 = shalt.err (!%p191_p9)
}
  0x44   :  { %117 = dma.vmem_to_hbm [thread:$0]  %s115_s6, 16, %s259_s2, [#allocation5]  }
  0x45   :  { %199 = dma.done.wait [#allocation5], 16  }
  0x46   :  { %200 = vsyncadd [#allocation5], 4294967280 }
  0x47   :  { %121 = vsyncpa [#allocation4], 1 }
  0x48   :  { %122 = vsyncpa [#allocation7], 1 }
  0x49   :  { %123 = vsyncpa [#allocation5], 1 }

</bundles_post_ra>
